<compile_context>
chip_gen: v6e
topology: v6e:2x2x1
jax: 0.10.0
libtpu: 0.0.40
codegen_flags: <defaults>
</compile_context>

<pallas_src>
import jax
import jax.numpy as jnp
from jax.experimental import pallas as pl
from jax.experimental.pallas import tpu as pltpu


def _round_up(x, m):
    return (x + m - 1) // m * m


def _vmem_budgets():
    """Generation-aware (scoped-VMEM limit, activation-tile budget) in bytes."""
    try:
        cap = int(pltpu.get_tpu_info().vmem_capacity_bytes)
    except Exception:
        cap = 64 * 1024 * 1024  # assume the smallest (v7x-like) part if unknown
    if cap >= 100 * 1024 * 1024:                     # 128 MiB parts: v5e / v6e
        return 96 * 1024 * 1024, 64 * 1024 * 1024
    return 48 * 1024 * 1024, 32 * 1024 * 1024        # 64 MiB part: v7x


def _pick_spatial_tile(c1, c2, hw, act_itemsize, out_itemsize, act_budget):
    """Largest lane tile (multiple of 128) fitting the budget.

    Accounts for BOTH the double-buffered DMA tiles (x0, x1, out) and the
    single-buffered in-kernel intermediates: s and a (f32, C1*T each), the
    bf16 rhs copy (C1*T*2B) and the pre-cast f32 matmul result (C2*T*4B).
    """
    pipe_per_lane = 2 * (2 * c1 * act_itemsize + c2 * out_itemsize)
    interm_per_lane = 10 * c1 + 4 * c2
    per_lane = pipe_per_lane + interm_per_lane
    t = max(128, (act_budget // per_lane) // 128 * 128)
    return min(t, _round_up(hw, 128))


def _make_kernel(c1, small_path, compute_dtype, matmul_dtype, matmul_precision):
    def kernel(wn_ref, x0_ref, x1_ref, cw_ref, cb_ref, o_ref):
        # wn_ref: (2,) normalized fusion weights in SMEM
        # x0_ref, x1_ref: (C1, T) VMEM tiles (batch dim squeezed)
        # cw_ref: (C1, TC2, 1) when small_path else (TC2, C1); cb_ref: (TC2, 1) f32
        w0 = wn_ref[0].astype(compute_dtype)
        w1 = wn_ref[1].astype(compute_dtype)
        x0 = x0_ref[...].astype(compute_dtype)
        x1 = x1_ref[...].astype(compute_dtype)
        # weighted feature fusion + SiLU (VPU + EUP)
        s = w0 * x0 + w1 * x1                                  # (C1, T)
        a = s * jax.nn.sigmoid(s)                              # SiLU
        cb = cb_ref[...]                                       # (TC2, 1) f32
        t = a.shape[-1]
        if small_path:
            # Tiny channel product: 1x1 conv as C1 unrolled VPU multiply-adds,
            # skipping the (mostly idle) MXU.
            af = a.astype(jnp.float32)
            acc = jnp.broadcast_to(cb, (cb.shape[0], t))       # bias (hoisted)
            for c in range(c1):
                acc = acc + cw_ref[c] * af[c:c + 1, :]         # (TC2,1)*(1,T)
            o_ref[...] = acc.astype(o_ref.dtype)
        else:
            lhs = cw_ref[...]                                  # (TC2, C1) already matmul_dtype
            rhs = a.astype(matmul_dtype)                       # (C1, T)
            out = jnp.dot(lhs, rhs,
                          preferred_element_type=jnp.float32,
                          precision=matmul_precision)          # f32 accumulation
            o_ref[...] = (out + cb).astype(o_ref.dtype)
    return kernel


def bifpn_add2(x0, x1, fusion_w, conv_w, conv_b, *, epsilon=1e-4,
               out_dtype=None, compute_dtype=jnp.float32, bf16_matmul=None,
               spatial_tile=None, buffer_count=None):
    """x0, x1: (N, C1, H, W) float32 or bfloat16.  conv_w: (C2, C1) (1x1 kernel
    squeezed).  conv_b: (C2,).  fusion_w: (2,).

    out_dtype defaults to the activation dtype (bf16 I/O halves HBM traffic of
    this bandwidth-bound op).  bf16_matmul defaults to "activations are bf16".
    """
    N, C1, H, W = x0.shape
    assert x1.shape == x0.shape
    C2 = conv_w.shape[0]
    HW = H * W

    if out_dtype is None:
        out_dtype = x0.dtype
    if bf16_matmul is None:
        bf16_matmul = (x0.dtype == jnp.bfloat16)

    # glue: normalize fusion weights (tiny scalar op, matches PyTorch forward)
    fw = fusion_w.astype(jnp.float32)
    wn = fw / (jnp.sum(fw) + epsilon)

    # glue: NCHW-native — only collapse spatial dims (free reshape, no transpose)
    x0_f = x0.reshape(N, C1, HW)
    x1_f = x1.astype(x0.dtype).reshape(N, C1, HW)
    cb = conv_b.reshape(C2, 1).astype(jnp.float32)

    vmem_limit, act_budget = _vmem_budgets()
    act_isz = jnp.dtype(x0.dtype).itemsize
    out_isz = jnp.dtype(out_dtype).itemsize
    thw = spatial_tile or _pick_spatial_tile(C1, C2, HW, act_isz, out_isz, act_budget)

    n_s = pl.cdiv(HW, thw)
    tc2, n_c2 = C2, 1
    # Degenerate-grid handling for megacore (v7x has 2 TensorCores): ensure at
    # least 2 parallel programs by splitting spatial, else output channels.
    if N * n_s < 2:
        if HW > 128:
            thw = max(128, _round_up(pl.cdiv(HW, 2), 128))
            n_s = pl.cdiv(HW, thw)
        if N * n_s < 2 and C2 % 16 == 0:
            tc2, n_c2 = C2 // 2, 2
    grid = (N, n_s, n_c2)

    small_path = (C1 * C2 <= 64)           # VPU unroll only when it beats the MXU
    matmul_dtype = jnp.bfloat16 if bf16_matmul else jnp.float32
    matmul_precision = None if bf16_matmul else jax.lax.Precision.HIGHEST

    if small_path:
        # per-input-channel weight columns, indexed along the leading axis (f32)
        cw_arg = jnp.transpose(conv_w, (1, 0)).reshape(C1, C2, 1).astype(jnp.float32)
        cw_spec = pl.BlockSpec((C1, tc2, 1), lambda n, s, c: (0, c, 0))
    else:
        # grid-invariant weight; dtype cast hoisted into glue (done once)
        cw_arg = conv_w.astype(matmul_dtype)                    # (C2, C1)
        cw_spec = pl.BlockSpec((tc2, C1), lambda n, s, c: (c, 0))

    act_kwargs = {}
    if buffer_count is not None:
        act_kwargs["pipeline_mode"] = pl.Buffered(buffer_count)

    kernel = _make_kernel(C1, small_path, compute_dtype, matmul_dtype, matmul_precision)

    out = pl.pallas_call(
        kernel,
        out_shape=jax.ShapeDtypeStruct((N, C2, HW), out_dtype),
        grid_spec=pltpu.PrefetchScalarGridSpec(
            num_scalar_prefetch=0,
            grid=grid,
            in_specs=[
                pl.BlockSpec(memory_space=pltpu.MemorySpace.SMEM),        # wn (2,)
                pl.BlockSpec((None, C1, thw),
                             lambda n, s, c: (n, 0, s), **act_kwargs),    # x0 tile
                pl.BlockSpec((None, C1, thw),
                             lambda n, s, c: (n, 0, s), **act_kwargs),    # x1 tile
                cw_spec,                                                  # conv W (grid-invariant)
                pl.BlockSpec((tc2, 1), lambda n, s, c: (c, 0)),           # conv b
            ],
            out_specs=pl.BlockSpec((None, tc2, thw), lambda n, s, c: (n, c, s)),
        ),
        compiler_params=pltpu.CompilerParams(
            dimension_semantics=("parallel", "parallel", "parallel"),
            vmem_limit_bytes=vmem_limit,
        ),
    )(wn, x0_f, x1_f, cw_arg, cb)

    # glue: free reshape back to NCHW
    return out.reshape(N, C2, H, W)


def _reference(x0, x1, fusion_w, conv_w, conv_b, epsilon=1e-4):
    wn = fusion_w / (jnp.sum(fusion_w) + epsilon)
    s = wn[0] * x0 + wn[1] * x1                 # (N, C1, H, W)
    a = s * jax.nn.sigmoid(s)
    out = jnp.einsum("nchw,oc->nohw", a, conv_w,
                     precision=jax.lax.Precision.HIGHEST)
    return out + conv_b[None, :, None, None]


if __name__ == "__main__":
    key = jax.random.PRNGKey(0)
    k1, k2, k3, k4, k5, k6 = jax.random.split(key, 6)

    # --- small-channel (unrolled VPU) path, module-consistent small shapes ---
    N, C1, C2, H, W = 2, 4, 4, 16, 16
    x0 = jax.random.normal(k1, (N, C1, H, W), dtype=jnp.float32)
    x1 = jax.random.normal(k2, (N, C1, H, W), dtype=jnp.float32)
    fusion_w = jnp.ones((2,), dtype=jnp.float32)            # nn.Parameter(ones(2))
    conv_w = jax.random.normal(k3, (C2, C1), dtype=jnp.float32) * 0.1
    conv_b = jax.random.normal(k4, (C2,), dtype=jnp.float32) * 0.1

    out = jax.block_until_ready(bifpn_add2(x0, x1, fusion_w, conv_w, conv_b))
    ref = _reference(x0, x1, fusion_w, conv_w, conv_b)
    assert out.shape == (N, C2, H, W)
    assert jnp.allclose(out, ref, atol=1e-4, rtol=1e-4), \
        float(jnp.max(jnp.abs(out - ref)))

    # --- MXU path, f32 I/O (HIGHEST-precision matmul) ---
    C1b, C2b = 32, 32
    x0b = jax.random.normal(k5, (N, C1b, H, W), dtype=jnp.float32)
    x1b = jax.random.normal(k6, (N, C1b, H, W), dtype=jnp.float32)
    conv_wb = jax.random.normal(k3, (C2b, C1b), dtype=jnp.float32) * 0.1
    conv_bb = jax.random.normal(k4, (C2b,), dtype=jnp.float32) * 0.1

    outb = jax.block_until_ready(bifpn_add2(x0b, x1b, fusion_w, conv_wb, conv_bb))
    refb = _reference(x0b, x1b, fusion_w, conv_wb, conv_bb)
    assert jnp.allclose(outb, refb, atol=1e-4, rtol=1e-4), \
        float(jnp.max(jnp.abs(outb - refb)))

    # --- bf16-I/O path (bandwidth-optimized; reduced precision by design) ---
    outc = jax.block_until_ready(
        bifpn_add2(x0b.astype(jnp.bfloat16), x1b.astype(jnp.bfloat16),
                   fusion_w, conv_wb, conv_bb))
    assert outc.dtype == jnp.bfloat16
    assert jnp.allclose(outc.astype(jnp.float32), refb, atol=5e-2, rtol=5e-2), \
        float(jnp.max(jnp.abs(outc.astype(jnp.float32) - refb)))

    print("KERNEL_OK")
</pallas_src>

<mosaic_0001>
module attributes {stable_mosaic.version = 11 : i64} {
  func.func @kernel(%arg0: i32, %arg1: i32, %arg2: i32, %arg3: memref<2xf32, #tpu.memory_space<smem>>, %arg4: memref<1x4x256xf32, #tpu.memory_space<vmem>>, %arg5: memref<1x4x256xf32, #tpu.memory_space<vmem>>, %arg6: memref<4x4x1xf32, #tpu.memory_space<vmem>>, %arg7: memref<4x1xf32, #tpu.memory_space<vmem>>, %arg8: memref<1x4x256xf32, #tpu.memory_space<vmem>>) attributes {dimension_semantics = [#tpu.dimension_semantics<parallel>, #tpu.dimension_semantics<parallel>, #tpu.dimension_semantics<parallel>], iteration_bounds = array<i64: 2, 1, 1>, scalar_prefetch = 0 : i64, scratch_operands = 0 : i64, tpu.core_type = #tpu.core_type<tc>, window_params = [{transform_indices = @transform_0, window_bounds = array<i64: 2>}, {transform_indices = @transform_1, window_bounds = array<i64: 1, 4, 256>}, {transform_indices = @transform_2, window_bounds = array<i64: 1, 4, 256>}, {transform_indices = @transform_3, window_bounds = array<i64: 4, 4, 1>}, {transform_indices = @transform_4, window_bounds = array<i64: 4, 1>}, {transform_indices = @transform_5, window_bounds = array<i64: 1, 4, 256>}]} {
    %c0 = arith.constant 0 : index
    %0 = memref.load %arg3[%c0] : memref<2xf32, #tpu.memory_space<smem>>
    %c1 = arith.constant 1 : index
    %1 = memref.load %arg3[%c1] : memref<2xf32, #tpu.memory_space<smem>>
    %c0_0 = arith.constant 0 : index
    %c0_1 = arith.constant 0 : index
    %c0_2 = arith.constant 0 : index
    %2 = vector.load %arg4[%c0_0, %c0_1, %c0_2] : memref<1x4x256xf32, #tpu.memory_space<vmem>>, vector<1x4x256xf32>
    %3 = vector.shape_cast %2 : vector<1x4x256xf32> to vector<4x256xf32>
    %c0_3 = arith.constant 0 : index
    %c0_4 = arith.constant 0 : index
    %c0_5 = arith.constant 0 : index
    %4 = vector.load %arg5[%c0_3, %c0_4, %c0_5] : memref<1x4x256xf32, #tpu.memory_space<vmem>>, vector<1x4x256xf32>
    %5 = vector.shape_cast %4 : vector<1x4x256xf32> to vector<4x256xf32>
    %6 = vector.broadcast %0 : f32 to vector<4x256xf32>
    %7 = arith.mulf %6, %3 : vector<4x256xf32>
    %8 = vector.broadcast %1 : f32 to vector<4x256xf32>
    %9 = arith.mulf %8, %5 : vector<4x256xf32>
    %10 = arith.addf %7, %9 : vector<4x256xf32>
    %11 = arith.negf %10 : vector<4x256xf32>
    %12 = math.exp %11 : vector<4x256xf32>
    %cst = arith.constant 1.000000e+00 : f32
    %13 = vector.broadcast %cst : f32 to vector<4x256xf32>
    %14 = arith.addf %13, %12 : vector<4x256xf32>
    %15 = arith.divf %13, %14 : vector<4x256xf32>
    %16 = arith.mulf %10, %15 : vector<4x256xf32>
    %c0_6 = arith.constant 0 : index
    %c0_7 = arith.constant 0 : index
    %17 = vector.load %arg7[%c0_6, %c0_7] : memref<4x1xf32, #tpu.memory_space<vmem>>, vector<4x1xf32>
    %18 = vector.shape_cast %17 : vector<4x1xf32> to vector<4x1xf32>
    %19 = vector.broadcast %18 : vector<4x1xf32> to vector<4x256xf32>
    %c0_8 = arith.constant 0 : index
    %c0_9 = arith.constant 0 : index
    %c0_10 = arith.constant 0 : index
    %20 = vector.load %arg6[%c0_8, %c0_9, %c0_10] : memref<4x4x1xf32, #tpu.memory_space<vmem>>, vector<1x4x1xf32>
    %21 = vector.shape_cast %20 : vector<1x4x1xf32> to vector<4x1xf32>
    %22 = vector.extract_strided_slice %16 {offsets = [0, 0], sizes = [1, 256], strides = [1, 1]} : vector<4x256xf32> to vector<1x256xf32>
    %23 = vector.broadcast %21 : vector<4x1xf32> to vector<4x256xf32>
    %24 = vector.broadcast %22 : vector<1x256xf32> to vector<4x256xf32>
    %25 = arith.mulf %23, %24 : vector<4x256xf32>
    %26 = arith.addf %19, %25 : vector<4x256xf32>
    %c1_11 = arith.constant 1 : index
    %c0_12 = arith.constant 0 : index
    %c0_13 = arith.constant 0 : index
    %27 = vector.load %arg6[%c1_11, %c0_12, %c0_13] : memref<4x4x1xf32, #tpu.memory_space<vmem>>, vector<1x4x1xf32>
    %28 = vector.shape_cast %27 : vector<1x4x1xf32> to vector<4x1xf32>
    %29 = vector.extract_strided_slice %16 {offsets = [1, 0], sizes = [1, 256], strides = [1, 1]} : vector<4x256xf32> to vector<1x256xf32>
    %30 = vector.broadcast %28 : vector<4x1xf32> to vector<4x256xf32>
    %31 = vector.broadcast %29 : vector<1x256xf32> to vector<4x256xf32>
    %32 = arith.mulf %30, %31 : vector<4x256xf32>
    %33 = arith.addf %26, %32 : vector<4x256xf32>
    %c2 = arith.constant 2 : index
    %c0_14 = arith.constant 0 : index
    %c0_15 = arith.constant 0 : index
    %34 = vector.load %arg6[%c2, %c0_14, %c0_15] : memref<4x4x1xf32, #tpu.memory_space<vmem>>, vector<1x4x1xf32>
    %35 = vector.shape_cast %34 : vector<1x4x1xf32> to vector<4x1xf32>
    %36 = vector.extract_strided_slice %16 {offsets = [2, 0], sizes = [1, 256], strides = [1, 1]} : vector<4x256xf32> to vector<1x256xf32>
    %37 = vector.broadcast %35 : vector<4x1xf32> to vector<4x256xf32>
    %38 = vector.broadcast %36 : vector<1x256xf32> to vector<4x256xf32>
    %39 = arith.mulf %37, %38 : vector<4x256xf32>
    %40 = arith.addf %33, %39 : vector<4x256xf32>
    %c3 = arith.constant 3 : index
    %c0_16 = arith.constant 0 : index
    %c0_17 = arith.constant 0 : index
    %41 = vector.load %arg6[%c3, %c0_16, %c0_17] : memref<4x4x1xf32, #tpu.memory_space<vmem>>, vector<1x4x1xf32>
    %42 = vector.shape_cast %41 : vector<1x4x1xf32> to vector<4x1xf32>
    %43 = vector.extract_strided_slice %16 {offsets = [3, 0], sizes = [1, 256], strides = [1, 1]} : vector<4x256xf32> to vector<1x256xf32>
    %44 = vector.broadcast %42 : vector<4x1xf32> to vector<4x256xf32>
    %45 = vector.broadcast %43 : vector<1x256xf32> to vector<4x256xf32>
    %46 = arith.mulf %44, %45 : vector<4x256xf32>
    %47 = arith.addf %40, %46 : vector<4x256xf32>
    %c0_18 = arith.constant 0 : index
    %c0_19 = arith.constant 0 : index
    %c0_20 = arith.constant 0 : index
    %48 = vector.load %arg8[%c0_18, %c0_19, %c0_20] : memref<1x4x256xf32, #tpu.memory_space<vmem>>, vector<1x4x256xf32>
    %49 = vector.shape_cast %48 : vector<1x4x256xf32> to vector<4x256xf32>
    %50 = vector.shape_cast %47 : vector<4x256xf32> to vector<1x4x256xf32>
    tpu.vector_store %arg8[%c0_18, %c0_19, %c0_20], %50 {strides = array<i32>} : memref<1x4x256xf32, #tpu.memory_space<vmem>>, vector<1x4x256xf32>,
    return
  }
  func.func @transform_0(%arg0: i32, %arg1: i32, %arg2: i32) -> i32 {
    %c0_i32 = arith.constant 0 : i32
    %c0_i32_0 = arith.constant 0 : i32
    return %c0_i32 : i32
  }
  func.func @transform_1(%arg0: i32, %arg1: i32, %arg2: i32) -> (i32, i32, i32) {
    %c0_i32 = arith.constant 0 : i32
    %c0_i32_0 = arith.constant 0 : i32
    return %arg0, %c0_i32, %arg1 : i32, i32, i32
  }
  func.func @transform_2(%arg0: i32, %arg1: i32, %arg2: i32) -> (i32, i32, i32) {
    %c0_i32 = arith.constant 0 : i32
    %c0_i32_0 = arith.constant 0 : i32
    return %arg0, %c0_i32, %arg1 : i32, i32, i32
  }
  func.func @transform_3(%arg0: i32, %arg1: i32, %arg2: i32) -> (i32, i32, i32) {
    %c0_i32 = arith.constant 0 : i32
    %c0_i32_0 = arith.constant 0 : i32
    %c0_i32_1 = arith.constant 0 : i32
    return %c0_i32, %arg2, %c0_i32_0 : i32, i32, i32
  }
  func.func @transform_4(%arg0: i32, %arg1: i32, %arg2: i32) -> (i32, i32) {
    %c0_i32 = arith.constant 0 : i32
    %c0_i32_0 = arith.constant 0 : i32
    return %arg2, %c0_i32 : i32, i32
  }
  func.func @transform_5(%arg0: i32, %arg1: i32, %arg2: i32) -> (i32, i32, i32) {
    %c0_i32 = arith.constant 0 : i32
    return %arg0, %arg2, %arg1 : i32, i32, i32
  }
}

</mosaic_0001>

<bundles_post_ra>
// kernel: tpu_custom_call.1
= control target key start
LH: loop header
LB: loop body
LE: loop exit
PB: predicated region body
PF: predicated region fallthrough
CT: control target
= control target key end

     0   :  { %s1122_s0 = inlined_call_operand.vmem [shape: f32[2], index: 0, kind: input, shape index: {}]   ;;  %s1123_s1 = inlined_call_operand.vmem [shape: f32[2,4,256], index: 1, kind: input, shape index: {}]   ;;  %s1124_s2 = inlined_call_operand.hbm [shape: f32[2,4,256], index: 2, kind: input, shape index: {}]   ;;  %s1125_s3 = inlined_call_operand.vmem [shape: f32[4,4,1], index: 3, kind: input, shape index: {}]   ;;  %s1126_s4 = inlined_call_operand.vmem [shape: f32[4,1], index: 4, kind: input, shape index: {}]   ;;  %s1127_s5 = inlined_call_operand.hbm [shape: f32[2,4,256], index: 5, kind: output, shape index: {}]  }
   0x1   :  { %1129 = sst [smem:[#allocation11_spill]] %s1122_s0 }
   0x2   :  { %10 = vsyncpa [#allocation5], 0 }
   0x3   :  { %11 = vsyncpa [#allocation3], 0 }
   0x4   :  { %13 = vsyncpa [#allocation3 + $0x1], 0 }
   0x5   :  { %14 = vsyncpa [#allocation4], 0 }
   0x6   :  { %16 = vsyncpa [#allocation4 + $0x1], 0  ;;  %s937_s18 = smov 0   ;;  %s939_s19 = smov 0  }
   0x7   :  { %s941_s20 = smov 0   ;;  %s943_s21 = smov 0  }
   0x8   :  { %s945_s22 = smov 0   ;;  %s947_s23 = smov 0  }
   0x9 LB: > { %s665_s24 = sadd.s32 4294967295, %s901_s23   ;;  %s666_s25 = sadd.s32 4294967294, %s901_s23   ;;  %s901_s23 = sphi %s947_s23, %s22_s23   ;;  %s897_s22 = sphi %s945_s22, %s1146_s22   ;;  %s893_s21 = sphi %s943_s21, %s1145_s21   ;;  %s889_s20 = sphi %s941_s20, %s1144_s20   ;;  %s885_s19 = sphi %s939_s19, %s1143_s19   ;;  %s881_s18 = sphi %s937_s18, %s1142_s18  }
   0xa   : > { %p112_p0 = scmp.ne.s32.totalorder %s885_s19, %s881_s18  ;;  %p971_p1 = scmp.eq.s32.totalorder %s665_s24, 0 }
   0xb   : > { %p975_p2 = scmp.eq.s32.totalorder %s665_s24, 1  ;;  %p198_p3 = scmp.eq.s32.totalorder %s666_s25, 1 }
   0xc   : > { %p981_p4 = por %p971_p1, %p112_p0  ;;  %p667_p5 = scmp.ge.s32.totalorder %s901_s23, 1 }
   0xd   : > { %p986_p6 = por %p198_p3, %p112_p0  ;;  %p205_p7 = scmp.lt.s32.totalorder %s901_s23, 3 }
   0xe   : > { %s1132_s28 = scalar_select %p981_p4, 1, 0 }
   0xf   : > { %s1133_s29 = scalar_select %p986_p6, 1, 0 }
  0x10   : > { %s1134_s0 = sld [smem:[#allocation11_spill]]  ;;  %p994_p8 = pnand %p667_p5, %p205_p7 }
  0x11   : > { %s41_s10 = sadd.s32 1, %s897_s22  ;;  %s99_s11 = sadd.s32 1, %s889_s20 }
  0x12   : > { %p702_p10 = pneg %p994_p8  ;;  %p43_p12 = scmp.ge.s32.totalorder %s41_s10, 2 }
  0x14   : > { %p1003_p11 = pnand %p702_p10, %p971_p1 }
  0x16   : > { %s218_s7 = sshll.u32 %s1134_s0, 4  ;;  %p776_p0 = pneg %p1003_p11  ;;  %s219_s7 = int_to_ptr.vmem [resolvable:$true] %s218_s7 }
  0x17   : > { %s774_s12 = scalar_lea.vmem %s219_s7, 16  ;;  %p782_p7 = scmp.lt.s32.totalorder %s219_s7, %s219_s7 }
  0x18   : > { %p775_p13 = scmp.ne.s32.totalorder %s219_s7, %s774_s12  ;;  %p783_p6 = scmp.lt.s32.totalorder %s774_s12, %s774_s12 }
  0x1a   : > { %p777_p3 = pnand %p776_p0, %p775_p13  ;;  %p784_p9 = por %p783_p6, %p782_p7 }
  0x1c   : > { %p778_p5 = pneg %p777_p3 }
  0x1e   : > { %p785_p4 = pnand %p784_p9, %p778_p5 }
  0x20   : > { %788 = shalt.err (!%p785_p4)
}
  0x21   : > { %s903_s13 = smov [#allocation2]   ;;  %s1148_s10 = smov (%p43_p12, %s41_s10), 0 }
  0x22   : > { %705 = dma.vmem_to_smem (!%p1003_p11), %s219_s7, 16, %s903_s13, [#allocation5]  }
  0x23   : > { %p106_p10 = scmp.ne.s32.totalorder %s889_s20, %s885_s19  ;;  %p107_p6 = scmp.eq.s32.totalorder %s901_s23, 0 }
  0x24   : > { %s94_s14 = ssub.s32 %s897_s22, %s1148_s10  ;;  %p715_p4 = scmp.lt.s32.totalorder %s901_s23, 2 }
  0x25   : > { %p97_p9 = scmp.eq.s32.totalorder %s94_s14, 0  ;;  %p108_p13 = por %p107_p6, %p106_p10 }
  0x26   : > { %p1023_p0 = por %p975_p2, %p106_p10  ;;  %s256_s16 = sand.u32 1, %s889_s20  }
  0x27   : > { %s1029_s17 = scalar_select %p97_p9, %s889_s20, %s99_s11  }
  0x28   : > { %s672_s24 = sshll.u32 %s256_s16, 3  ;;  %s691_s25 = sshll.u32 %s897_s22, 7 }
  0x29   : > { %s268_s7 = scalar_lea.hbm %s1124_s2, %s691_s25  ;;  %s260_s9 = scalar_lea.vmem [#allocation6], %s672_s24 }
  0x2a   : > { %s270_s12 = sshll.u32 %s260_s9, 4  ;;  %p1035_p11 = pnand %p715_p4, %p108_p13  ;;  %s271_s12 = int_to_ptr.vmem [resolvable:$true] %s270_s12 }
  0x2b   : > { %s257_s27 = scalar_lea.sflag [#allocation3], %s256_s16  ;;  %s802_s14 = scalar_lea.vmem %s271_s12, 128 }
  0x2c   : > { %p791_p2 = pneg %p1035_p11  ;;  %p803_p12 = scmp.ne.s32.totalorder %s271_s12, %s802_s14 }
  0x2d   : > { %s904_s11 = smov [#allocation6]  }
  0x2e   : > { %p805_p3 = pnand %p803_p12, %p791_p2  ;;  %s807_s0 = sshll.u32 %s904_s11, 4  ;;  %s808_s0 = int_to_ptr.vmem [resolvable:$false] %s807_s0 }
  0x2f   : > { %s809_s30 = scalar_lea.vmem %s808_s0, 256  ;;  %p810_p7 = scmp.lt.s32.totalorder %s271_s12, %s808_s0 }
  0x30   : > { %p806_p5 = pneg %p805_p3  ;;  %p811_p10 = scmp.lt.s32.totalorder %s809_s30, %s802_s14 }
  0x32   : > { %p812_p6 = por %p811_p10, %p810_p7 }
  0x34   : > { %p813_p9 = pnand %p812_p6, %p806_p5 }
  0x36   : > { %816 = shalt.err (!%p813_p9)
}
  0x37   : > { %709 = dma.hbm_to_vmem [thread:$0]  (!%p1035_p11), %s268_s7, 128, %s271_s12, %s257_s27  }
  0x38   : > { %279 = sbr.rel (%p994_p8) target bundleno = 221 (0xdd), region = 40 }
  0x3d   : > { %868 = dma.done.wait (%p971_p1), [#allocation5], 16  }
  0x3e   : > { %870 = vsyncadd (%p971_p1), [#allocation5], 4294967280  ;;  %s1050_s16 = sand.u32 1, %s885_s19   ;;  %p1139_p4 = scmp.ne.s32.totalorder %s1132_s28, 0 }
  0x3f   : > { %s677_s0 = sshll.u32 %s1050_s16, 3  ;;  %s286_s24 = scalar_lea.sflag [#allocation3], %s1050_s16 }
  0x40   : > { %s289_s25 = scalar_lea.vmem [#allocation6], %s677_s0 }
  0x41   : > { %872 = dma.done.wait (%p1139_p4), %s286_s24, 128  }
  0x42   : > { %874 = vsyncadd (%p1139_p4), %s286_s24, 4294967168 }
  0x43   : > { %294 = sfence }
  0x44   : > { %v683_v0 = vld [vmem:[%s1125_s3 + $0x4] sm:$0xf]  ;;  %v376_v1 = vld [vmem:[%s1125_s3] sm:$0xf]  ;;  %v905_v2 = vmov 0   ;;  %p335_p1 = scmp.lt.s32.totalorder %s893_s21, 1  ;;  %v383_v16 = vlaneseq }
  0x45   : > { %769 = vset.pattern.permute.xlu1 %v905_v2  ;;  %768 = vset.pattern.permute.xlu0 %v905_v2  ;;  %v684_v3 = vld [vmem:[%s1125_s3 + $0x8] sm:$0xf]  ;;  %v370_v4 = vld [vmem:[%s1126_s4] sm:$0xf]  ;;  %v685_v5 = vld [vmem:[%s1125_s3 + $0xc] sm:$0xf] }
  0x46   : > { %409 = vperm.xlu1 %769, %v683_v0   ;;  %379 = vperm.xlu0 %768, %v376_v1   ;;  %s336_s11 = scalar_select %p335_p1, %s893_s21, 1  ;;  %v357_v7 = vld [vmem:[%s289_s25] sm:$0xff]  ;;  %v384_v17 = vshrl.u32 %v383_v16, 7 }
  0x47   : > { %s354_s30 = sld [smem:[#allocation2]]  ;;  %s693_s25 = sshll.u32 %s893_s21, 7 }
  0x48   : > { %s681_s24 = sld [smem:[#allocation2 + $0x1]]  ;;  %s692_s8 = sshll.u32 %s336_s11, 3  ;;  %v385_v20 = vsub.s32 0, %v384_v17  ;;  %v389_v21 = vsub.s32 4, %v384_v17  ;;  %v414_v22 = vsub.s32 1, %v384_v17  ;;  %v418_v23 = vsub.s32 5, %v384_v17 }
  0x49   : > { %s342_s7 = scalar_lea.vmem %s1123_s1, %s692_s8  ;;  %v443_v26 = vsub.s32 2, %v384_v17  ;;  %v447_v27 = vsub.s32 6, %v384_v17  ;;  %v472_v28 = vsub.s32 3, %v384_v17  ;;  %v476_v29 = vsub.s32 7, %v384_v17  ;;  %s333_s9 = scalar_lea.vmem [#allocation7], %s677_s0 }
  0x4a   : > { %438 = vperm.xlu1 %769, %v684_v3   ;;  %373 = vperm.xlu0 %768, %v370_v4   ;;  %v356_v6 = vld [vmem:[%s342_s7] sm:$0xff]  ;;  %s516_s12 = sshll.u32 %s333_s9, 4  ;;  %s514_s27 = scalar_lea.hbm %s1127_s5, %s693_s25  ;;  %s517_s12 = int_to_ptr.vmem [resolvable:$true] %s516_s12 }
  0x4b   : > { %s498_s14 = scalar_lea.sflag [#allocation4], %s1050_s16  ;;  %s817_s11 = scalar_lea.vmem %s517_s12, 128 }
  0x4c   : > { %p818_p8 = scmp.ne.s32.totalorder %s517_s12, %s817_s11 }
  0x4d   : > { %v358_v8 = vstv %s354_s30  ;;  %s906_s30 = smov [#allocation7]  }
  0x4e   : > { %467 = vperm.xlu0 %768, %v685_v5   ;;  %v360_v9 = vstv %s681_s24  ;;  %v359_v10 = vmul.f32 %v358_v8, %v356_v6  ;;  %p819_p13 = pnand %p818_p8, %p1023_p0  ;;  %s821_s21 = sshll.u32 %s906_s30, 4  ;;  %s822_s21 = int_to_ptr.vmem [resolvable:$false] %s821_s21 }
  0x4f   : > { %v361_v11 = vmul.f32 %v360_v9, %v357_v7  ;;  %s823_s0 = scalar_lea.vmem %s822_s21, 256  ;;  %p824_p2 = scmp.lt.s32.totalorder %s517_s12, %s822_s21 }
  0x50   : > { %p820_p11 = pneg %p819_p13  ;;  %p825_p12 = scmp.lt.s32.totalorder %s823_s0, %s817_s11 }
  0x51   : > { %v362_v12 = vadd.f32 %v361_v11, %v359_v10 }
  0x52   : > { %p826_p3 = por %p825_p12, %p824_p2 }
  0x53   : > { %v682_v13 = vmul.f32 -1.442695, %v362_v12 }
  0x54   : > { %p827_p5 = pnand %p826_p3, %p820_p11 }
  0x55   : > { %770 = vpow2.f32 %v682_v13 }
  0x62   : > { %v771_v14 = vpop.eup %770 }
  0x63   : > { %v366_v15 = vadd.f32 1.0, %v771_v14 }
  0x65   : > { %772 = vrcp.f32 %v366_v15 }
  0x72   : > { %v773_v18 = vpop.eup %772 }
  0x73   : > { %v369_v19 = vmul.f32 %v773_v18, %v362_v12 }
  0x75   : > { %v386_v24 = vrot.slane %v369_v19, %v385_v20  ;;  %v390_v25 = vrot.slane %v369_v19, %v389_v21  ;;  %v415_v30 = vrot.slane %v369_v19, %v414_v22  ;;  %v419_v31 = vrot.slane %v369_v19, %v418_v23 }
  0x76   : > { %v444_v34 = vrot.slane %v369_v19, %v443_v26  ;;  %v448_v35 = vrot.slane %v369_v19, %v447_v27  ;;  %v473_v38 = vrot.slane %v369_v19, %v472_v28  ;;  %v477_v39 = vrot.slane %v369_v19, %v476_v29 }
  0x77   : > { %v396_v32 = vrot.slane %v386_v24, %v385_v20  ;;  %v400_v33 = vrot.slane %v390_v25, %v385_v20  ;;  %v425_v40 = vrot.slane %v415_v30, %v414_v22  ;;  %v429_v41 = vrot.slane %v419_v31, %v414_v22 }
  0x78   : > { %v454_v44 = vrot.slane %v444_v34, %v443_v26  ;;  %v458_v45 = vrot.slane %v448_v35, %v443_v26  ;;  %v483_v48 = vrot.slane %v473_v38, %v472_v28  ;;  %v487_v49 = vrot.slane %v477_v39, %v472_v28 }
  0xc1   : > { %v410_v36 = vpop.permute.xlu1 %409  ;;  %v380_v37 = vpop.permute.xlu0 %379 }
  0xc2   : > { %v401_v42 = vmul.f32 %v396_v32, %v380_v37  ;;  %v402_v43 = vmul.f32 %v400_v33, %v380_v37  ;;  %v430_v50 = vmul.f32 %v425_v40, %v410_v36  ;;  %v431_v51 = vmul.f32 %v429_v41, %v410_v36 }
  0xc5   : > { %v439_v46 = vpop.permute.xlu1 %438  ;;  %v374_v47 = vpop.permute.xlu0 %373 }
  0xc6   : > { %v403_v52 = vadd.f32 %v401_v42, %v374_v47  ;;  %v404_v53 = vadd.f32 %v402_v43, %v374_v47  ;;  %v459_v54 = vmul.f32 %v454_v44, %v439_v46  ;;  %v460_v55 = vmul.f32 %v458_v45, %v439_v46 }
  0xc8   : > { %v432_v56 = vadd.f32 %v430_v50, %v403_v52  ;;  %v433_v57 = vadd.f32 %v431_v51, %v404_v53 }
  0xc9   : > { %v468_v58 = vpop.permute.xlu0 %467 }
  0xca   : > { %v461_v59 = vadd.f32 %v459_v54, %v432_v56  ;;  %v462_v60 = vadd.f32 %v460_v55, %v433_v57  ;;  %v488_v61 = vmul.f32 %v483_v48, %v468_v58  ;;  %v489_v62 = vmul.f32 %v487_v49, %v468_v58 }
  0xcc   : > { %v490_v63 = vadd.f32 %v488_v61, %v461_v59  ;;  %v491_v0 = vadd.f32 %v489_v62, %v462_v60 }
  0xce   : > { %v494_v1 = vcombine.low %v490_v63, %v491_v0 }
  0xd0   : > { %496 = vst [vmem:[%s333_s9] sm:$0xff] %v494_v1 }
  0xd1   : > { %830 = shalt.err (!%p827_p5)
}
  0xd2   : > { %s831_s24 = scalar_lea.hbm %s514_s27, 128  ;;  %s835_s26 = scalar_lea.hbm %s1127_s5, 256 }
  0xd3   : > { %p832_p7 = scmp.ne.s32.totalorder %s514_s27, %s831_s24  ;;  %p836_p9 = scmp.lt.s32.totalorder %s514_s27, %s1127_s5 }
  0xd4   : > { %p837_p4 = scmp.lt.s32.totalorder %s835_s26, %s831_s24 }
  0xd5   : > { %p833_p10 = pnand %p832_p7, %p1023_p0 }
  0xd6   : > { %p838_p1 = por %p837_p4, %p836_p9 }
  0xd7   : > { %p834_p6 = pneg %p833_p10 }
  0xd9   : > { %p839_p8 = pnand %p838_p1, %p834_p6 }
  0xdb   : > { %842 = shalt.err (!%p839_p8)
}
  0xdc   : > { %700 = dma.vmem_to_hbm [thread:$0]  (%p1023_p0), %s517_s12, 128, %s514_s27, %s498_s14  }
  0xdd PF: > { %s528_s25 = sand.u32 1, %s881_s18   ;;  %p1140_p13 = scmp.ne.s32.totalorder %s1133_s29, 0 }
  0xde   : > { %p1141_p11 = scmp.ge.s32.totalorder %s901_s23, 2  ;;  %s529_s9 = scalar_lea.sflag [#allocation4], %s528_s25 }
  0xe0   : > { %p711_p2 = pnand %p1141_p11, %p1140_p13 }
  0xe2   : > { %p712_p12 = pneg %p711_p2 }
  0xe4   : > { %876 = dma.done.wait (%p712_p12), %s529_s9, 128  }
  0xe5   : > { %878 = vsyncadd (%p712_p12), %s529_s9, 4294967168  ;;  %s22_s23 = sadd.s32 1, %s901_s23   ;;  %s1142_s18 = smov %s885_s19 }
  0xe6   : > { %p19_p3 = scmp.ge.s32.totalorder %s22_s23, 4   ;;  %s1143_s19 = smov %s889_s20 }
  0xe7   : > { %s1144_s20 = smov %s1029_s17  ;;  %s1145_s21 = smov %s897_s22 }
  0xe8   : > { %s1146_s22 = smov %s1148_s10  ;;  %21 = sbr.rel (!%p19_p3) target bundleno = 9 (0x9), region = 102 }
  0xed   :  { %534 = vsyncpa [#allocation3], 1 }
  0xee   :  { %536 = vsyncpa [#allocation3 + $0x1], 1 }
  0xef   :  { %537 = vsyncpa [#allocation4], 1 }
  0xf0   :  { %539 = vsyncpa [#allocation4 + $0x1], 1 }
  0xf1   :  { %540 = vsyncpa [#allocation5], 1 }
  0xf2   :  { %542 = vsyncpa [#allocation5 + $0x1], 1 }

</bundles_post_ra>
